<compile_context>
chip_gen: v7x
topology: tpu7x:2x2x1
jax: 0.10.0
libtpu: 0.0.40
codegen_flags: <defaults>
</compile_context>

<pallas_src>
import functools

import jax
import jax.numpy as jnp
from jax import lax
from jax.experimental import pallas as pl
from jax.experimental.pallas import tpu as pltpu


HIDDEN = 128


def _disc_kernel(x_ref, w1_ref, b1_ref, w2r_ref, b2_ref, o_ref, *,
                 negative_slope, mxu_bf16):
    x = x_ref[...]
    w1 = w1_ref[...]
    if mxu_bf16:
        # Down-cast only for the MXU pass; HBM storage stays f32 and the
        # accumulation is f32 (preferred_element_type). Big win on v5e where
        # the f32 matmul is compute-bound; neutral elsewhere.
        x = x.astype(jnp.bfloat16)
        w1 = w1.astype(jnp.bfloat16)

    # First linear: [TB, D] @ [D, 128] (+ [1, 128]), f32 accumulate on the MXU.
    h = jnp.dot(x, w1, preferred_element_type=jnp.float32) + b1_ref[...]

    # LeakyReLU with the (unusual) negative_slope = img_dim, matching the module.
    h = jnp.where(h >= 0.0, h, negative_slope * h)

    # Second linear as a [1, 128] x [TB, 128] contraction -> [1, TB] so the
    # result (and the store) is lane-dense instead of a last-dim-1 slab.
    z = lax.dot_general(
        w2r_ref[...], h,
        dimension_numbers=(((1,), (1,)), ((), ())),
        preferred_element_type=jnp.float32,
    ) + b2_ref[0, 0]

    o_ref[...] = jax.nn.sigmoid(z)


def _choose_block_b(batch, img_dim, itemsize):
    """Lane-aligned batch tile: big enough to amortize per-step overhead,
    small enough that (a) the grid has >= ~4 steps when B allows it (so both
    v7x TensorCores get work) and (b) the double-buffered x tile fits VMEM."""
    cap = 2048 if itemsize >= 4 else 4096
    quarter = ((batch // 4) // 128) * 128          # aim for >= 4 grid steps
    tb = max(128, min(cap, quarter if quarter > 0 else 128))
    # VMEM budget for the double-buffered x tile (v7x-safe, 32 MiB scoped limit).
    budget = 20 * 1024 * 1024
    max_tb = ((budget // (2 * img_dim * itemsize)) // 128) * 128
    if max_tb > 0:
        tb = min(tb, max_tb)
    return max(128, tb)


def discriminator_forward(x, w1, b1, w2_row, b2, *, block_b=None, mxu_bf16=False):
    """x: [B, img_dim].  Returns [B, 1] float32 in (0, 1).

    w1: [img_dim, 128] (transposed torch weight), b1: [1, 128],
    w2_row: [1, 128] (torch layout [out, in] of the 128->1 layer), b2: [1, 1].
    """
    B, img_dim = x.shape
    negative_slope = float(img_dim)  # nn.LeakyReLU(img_dim, 128) -> slope = img_dim

    if block_b is None:
        block_b = _choose_block_b(B, img_dim, x.dtype.itemsize)
    assert block_b % 128 == 0, "batch tile must be lane/MXU aligned (multiple of 128)"

    grid_b = pl.cdiv(B, block_b)  # last block may be partial; Pallas masks it

    kernel = functools.partial(
        _disc_kernel, negative_slope=negative_slope, mxu_bf16=mxu_bf16)

    cost = pl.CostEstimate(
        flops=2 * B * img_dim * HIDDEN + 2 * B * HIDDEN,
        transcendentals=B,  # sigmoid exp per row
        bytes_accessed=(B * img_dim * x.dtype.itemsize
                        + img_dim * HIDDEN * w1.dtype.itemsize
                        + 2 * HIDDEN * 4 + 4 + B * 4),
    )

    out = pl.pallas_call(
        kernel,
        out_shape=jax.ShapeDtypeStruct((1, B), jnp.float32),
        grid=(grid_b,),
        in_specs=[
            pl.BlockSpec((block_b, img_dim), lambda i: (i, 0)),    # x tile (pipelined)
            pl.BlockSpec((img_dim, HIDDEN), lambda i: (0, 0)),     # W1 [in, out], resident
            pl.BlockSpec((1, HIDDEN), lambda i: (0, 0)),           # b1, resident
            pl.BlockSpec((1, HIDDEN), lambda i: (0, 0)),           # W2 row [out, in], resident
            pl.BlockSpec(memory_space=pltpu.MemorySpace.SMEM),     # b2 scalar in SMEM
        ],
        out_specs=pl.BlockSpec((1, block_b), lambda i: (0, i)),    # lane-dense output slab
        compiler_params=pltpu.CompilerParams(
            dimension_semantics=("parallel",),   # shard batch tiles across TCs (v7x)
            vmem_limit_bytes=32 * 1024 * 1024,   # v7x-safe; tile heuristic stays within it
        ),
        cost_estimate=cost,
    )(x, w1, b1, w2_row, b2)

    return out.reshape(B, 1)


def init_params(key, img_dim):
    """Deterministic PyTorch-style (Kaiming-uniform) Linear init."""
    k1, k2, k3, k4 = jax.random.split(key, 4)
    bound1 = 1.0 / jnp.sqrt(img_dim)
    bound2 = 1.0 / jnp.sqrt(HIDDEN)
    # Layer 1 stored as [in, out] (transpose of torch's [out, in]) for x @ W.
    w1 = jax.random.uniform(k1, (img_dim, HIDDEN), jnp.float32, -bound1, bound1)
    b1 = jax.random.uniform(k2, (1, HIDDEN), jnp.float32, -bound1, bound1)
    # Layer 2 stored as a [out=1, in=128] row (torch layout).
    w2_row = jax.random.uniform(k3, (1, HIDDEN), jnp.float32, -bound2, bound2)
    b2 = jax.random.uniform(k4, (1, 1), jnp.float32, -bound2, bound2)
    return w1, b1, w2_row, b2


if __name__ == "__main__":
    key = jax.random.PRNGKey(0)
    k_x, k_p = jax.random.split(key)

    batch = 320     # deliberately NOT a multiple of the 128-row tile -> partial last block
    img_dim = 128   # small stand-in for e.g. 28*28 = 784

    x = jax.random.normal(k_x, (batch, img_dim), jnp.float32)
    w1, b1, w2_row, b2 = init_params(k_p, img_dim)

    out = jax.block_until_ready(discriminator_forward(x, w1, b1, w2_row, b2))

    # f32 reference at HIGHEST precision (the slope=img_dim quirk amplifies any
    # matmul truncation error before the sigmoid, so the reference must itself
    # be accurate; the kernel output lives in (0,1) so atol is the meaningful bound).
    hp = lax.Precision.HIGHEST
    h = jnp.dot(x, w1, precision=hp) + b1
    h = jnp.where(h >= 0.0, h, float(img_dim) * h)
    ref = jax.nn.sigmoid(jnp.dot(h, w2_row.T, precision=hp) + b2)

    assert out.shape == (batch, 1)
    assert jnp.allclose(out, ref, atol=1e-3, rtol=1e-3), float(jnp.max(jnp.abs(out - ref)))

    # v5e fast path: bf16 MXU inputs (in-kernel downcast, no extra HBM traffic),
    # f32 accumulation.  Under slope=img_dim the sigmoid saturates, so we only
    # sanity-check shape / finiteness / range here, not element-wise parity.
    out_bf16 = jax.block_until_ready(
        discriminator_forward(x, w1, b1, w2_row, b2, mxu_bf16=True))
    assert out_bf16.shape == (batch, 1)
    assert bool(jnp.all(jnp.isfinite(out_bf16)))
    assert bool(jnp.all((out_bf16 >= 0.0) & (out_bf16 <= 1.0)))

    print("KERNEL_OK")
</pallas_src>

<mosaic_0001>
module attributes {stable_mosaic.version = 11 : i64} {
  func.func @_disc_kernel(%arg0: i32, %arg1: memref<128x128xf32, #tpu.memory_space<vmem>>, %arg2: memref<128x128xf32, #tpu.memory_space<vmem>>, %arg3: memref<1x128xf32, #tpu.memory_space<vmem>>, %arg4: memref<1x128xf32, #tpu.memory_space<vmem>>, %arg5: memref<1x1xf32, #tpu.memory_space<smem>>, %arg6: memref<1x128xf32, #tpu.memory_space<vmem>>) attributes {dimension_semantics = [#tpu.dimension_semantics<parallel>], iteration_bounds = array<i64: 3>, scalar_prefetch = 0 : i64, scratch_operands = 0 : i64, tpu.core_type = #tpu.core_type<tc>, window_params = [{transform_indices = @transform_0, window_bounds = array<i64: 128, 128>}, {pipeline_mode = #tpu.pipeline_mode<synchronous>, transform_indices = @transform_1, window_bounds = array<i64: 128, 128>}, {pipeline_mode = #tpu.pipeline_mode<synchronous>, transform_indices = @transform_2, window_bounds = array<i64: 1, 128>}, {pipeline_mode = #tpu.pipeline_mode<synchronous>, transform_indices = @transform_3, window_bounds = array<i64: 1, 128>}, {transform_indices = @transform_4, window_bounds = array<i64: 1, 1>}, {transform_indices = @transform_5, window_bounds = array<i64: 1, 128>}]} {
    %c0 = arith.constant 0 : index
    %c0_0 = arith.constant 0 : index
    %0 = vector.load %arg1[%c0, %c0_0] : memref<128x128xf32, #tpu.memory_space<vmem>>, vector<128x128xf32>
    %c0_1 = arith.constant 0 : index
    %c0_2 = arith.constant 0 : index
    %1 = vector.load %arg2[%c0_1, %c0_2] : memref<128x128xf32, #tpu.memory_space<vmem>>, vector<128x128xf32>
    %cst = arith.constant dense<0.000000e+00> : vector<128x128xf32>
    %2 = tpu.matmul %0, %1, %cst {dimension_numbers = #tpu.dot_dimension_numbers<[1], [0], [0], [1], [0, 0, 1, 1], [], []>} : vector<128x128xf32>, vector<128x128xf32>, vector<128x128xf32> -> vector<128x128xf32>
    %c0_3 = arith.constant 0 : index
    %c0_4 = arith.constant 0 : index
    %3 = vector.load %arg3[%c0_3, %c0_4] : memref<1x128xf32, #tpu.memory_space<vmem>>, vector<1x128xf32>
    %4 = vector.broadcast %3 : vector<1x128xf32> to vector<128x128xf32>
    %5 = arith.addf %2, %4 : vector<128x128xf32>
    %cst_5 = arith.constant 0.000000e+00 : f32
    %6 = vector.broadcast %cst_5 : f32 to vector<128x128xf32>
    %7 = arith.cmpf oge, %5, %6 : vector<128x128xf32>
    %cst_6 = arith.constant 1.280000e+02 : f32
    %8 = vector.broadcast %cst_6 : f32 to vector<128x128xf32>
    %9 = arith.mulf %8, %5 : vector<128x128xf32>
    %10 = arith.select %7, %5, %9 : vector<128x128xi1>, vector<128x128xf32>
    %c0_7 = arith.constant 0 : index
    %c0_8 = arith.constant 0 : index
    %11 = vector.load %arg4[%c0_7, %c0_8] : memref<1x128xf32, #tpu.memory_space<vmem>>, vector<1x128xf32>
    %cst_9 = arith.constant dense<0.000000e+00> : vector<1x128xf32>
    %12 = tpu.matmul %11, %10, %cst_9 {dimension_numbers = #tpu.dot_dimension_numbers<[1], [1], [0], [0], [0, 0, 1, 0], [], []>} : vector<1x128xf32>, vector<128x128xf32>, vector<1x128xf32> -> vector<1x128xf32>
    %c0_10 = arith.constant 0 : index
    %c0_11 = arith.constant 0 : index
    %13 = memref.load %arg5[%c0_10, %c0_11] : memref<1x1xf32, #tpu.memory_space<smem>>
    %14 = vector.broadcast %13 : f32 to vector<1x128xf32>
    %15 = arith.addf %12, %14 : vector<1x128xf32>
    %16 = arith.negf %15 : vector<1x128xf32>
    %17 = math.exp %16 : vector<1x128xf32>
    %cst_12 = arith.constant 1.000000e+00 : f32
    %18 = vector.broadcast %cst_12 : f32 to vector<1x128xf32>
    %19 = arith.addf %18, %17 : vector<1x128xf32>
    %20 = arith.divf %18, %19 : vector<1x128xf32>
    %c0_13 = arith.constant 0 : index
    %c0_14 = arith.constant 0 : index
    %21 = vector.load %arg6[%c0_13, %c0_14] : memref<1x128xf32, #tpu.memory_space<vmem>>, vector<1x128xf32>
    tpu.vector_store %arg6[%c0_13, %c0_14], %20 {strides = array<i32>} : memref<1x128xf32, #tpu.memory_space<vmem>>, vector<1x128xf32>,
    return
  }
  func.func @transform_0(%arg0: i32) -> (i32, i32) {
    %c0_i32 = arith.constant 0 : i32
    %c0_i32_0 = arith.constant 0 : i32
    return %arg0, %c0_i32 : i32, i32
  }
  func.func @transform_1(%arg0: i32) -> (i32, i32) {
    %c0_i32 = arith.constant 0 : i32
    %c0_i32_0 = arith.constant 0 : i32
    %c0_i32_1 = arith.constant 0 : i32
    return %c0_i32, %c0_i32_0 : i32, i32
  }
  func.func @transform_2(%arg0: i32) -> (i32, i32) {
    %c0_i32 = arith.constant 0 : i32
    %c0_i32_0 = arith.constant 0 : i32
    %c0_i32_1 = arith.constant 0 : i32
    return %c0_i32, %c0_i32_0 : i32, i32
  }
  func.func @transform_3(%arg0: i32) -> (i32, i32) {
    %c0_i32 = arith.constant 0 : i32
    %c0_i32_0 = arith.constant 0 : i32
    %c0_i32_1 = arith.constant 0 : i32
    return %c0_i32, %c0_i32_0 : i32, i32
  }
  func.func @transform_4(%arg0: i32) -> (i32, i32) {
    %c0_i32 = arith.constant 0 : i32
    %c0_i32_0 = arith.constant 0 : i32
    %c0_i32_1 = arith.constant 0 : i32
    return %c0_i32, %c0_i32_0 : i32, i32
  }
  func.func @transform_5(%arg0: i32) -> (i32, i32) {
    %c0_i32 = arith.constant 0 : i32
    %c0_i32_0 = arith.constant 0 : i32
    return %c0_i32, %arg0 : i32, i32
  }
}

</mosaic_0001>

<bundles_post_ra>
// kernel: tpu_custom_call.1
= control target key start
LH: loop header
LB: loop body
LE: loop exit
PB: predicated region body
PF: predicated region fallthrough
CT: control target
= control target key end

     0   :  { %s1365_s0 = inlined_call_operand.hbm [shape: f32[320,128], index: 0, kind: input, shape index: {}]   ;;  %s1366_s1 = inlined_call_operand.hbm [shape: f32[128,128], index: 1, kind: input, shape index: {}]   ;;  %s1367_s2 = inlined_call_operand.vmem [shape: f32[1,128], index: 2, kind: input, shape index: {}]   ;;  %s1368_s3 = inlined_call_operand.vmem [shape: f32[1,128], index: 3, kind: input, shape index: {}]   ;;  %s1369_s4 = inlined_call_operand.<no memory space> [shape: f32[1,1], index: 4, kind: input, shape index: {}]   ;;  %s1370_s5 = inlined_call_operand.hbm [shape: f32[1,320], index: 5, kind: output, shape index: {}]  }
   0x1   :  { %10 = sst [smem:[#allocation2]] %s1369_s4 }
   0x2   :  { %11 = vsyncpa [#allocation4], 0 }
   0x3   :  { %13 = vsyncpa [#allocation4 + $0x1], 0 }
   0x4   :  { %14 = vsyncpa [#allocation7], 0 }
   0x5   :  { %15 = vsyncpa [#allocation5], 0 }
   0x6   :  { %17 = vsyncpa [#allocation5 + $0x1], 0  ;;  %s1119_s20 = smov 0   ;;  %s1121_s21 = smov 0  }
   0x7   :  { %s1123_s22 = smov 0   ;;  %s1125_s23 = smov 0  }
   0x8 LB: > { %s1140_s4 = sadd.s32 4294967295, %s1074_s23   ;;  %s670_s24 = sadd.s32 4294967294, %s1074_s23   ;;  %s1074_s23 = sphi %s1125_s23, %s1391_s23   ;;  %s1070_s22 = sphi %s1123_s22, %s1390_s22   ;;  %s1066_s21 = sphi %s1121_s21, %s1389_s21   ;;  %s1062_s20 = sphi %s1119_s20, %s1388_s20  }
   0x9   : > { %s1144_s25 = sadd.s32 1, %s1074_s23   ;;  %s30_s26 = sadd.s32 1, %s1070_s22 }
   0xa   : > { %s27_s27 = ssub.s32 %s1074_s23, %s1144_s25  ;;  %p37_p0 = scmp.ne.s32.totalorder %s1070_s22, %s1066_s21 }
   0xb   : > { %p28_p1 = scmp.eq.s32.totalorder %s27_s27, 0  ;;  %p38_p2 = scmp.eq.s32.totalorder %s1074_s23, 0 }
   0xc   : > { %p43_p3 = scmp.ne.s32.totalorder %s1066_s21, %s1062_s20  ;;  %p1371_p4 = scmp.eq.s32.totalorder %s1140_s4, 0 }
   0xd   : > { %s1156_s28 = scalar_select %p28_p1, %s1070_s22, %s30_s26  }
   0xe   : > { %p1158_p5 = por %p38_p2, %p37_p0  ;;  %p1164_p6 = por %p1371_p4, %p43_p3 }
   0xf   : > { %p151_p7 = scmp.eq.s32.totalorder %s1140_s4, 2  ;;  %p157_p8 = scmp.eq.s32.totalorder %s670_s24, 2 }
  0x10   : > { %s1375_s29 = scalar_select %p1158_p5, 1, 0 }
  0x11   : > { %s1376_s30 = scalar_select %p1164_p6, 1, 0 }
  0x12   : > { %p671_p9 = scmp.ge.s32.totalorder %s1074_s23, 1  ;;  %p164_p10 = scmp.lt.s32.totalorder %s1074_s23, 4 }
  0x13   : > { %p1171_p11 = por %p151_p7, %p37_p0  ;;  %p1175_p12 = por %p157_p8, %p43_p3 }
  0x14   : > { %p1179_p13 = pnand %p671_p9, %p164_p10  ;;  %s1076_s9 = smov [#allocation6]  }
  0x15   : > { %s1377_s6 = scalar_select %p1171_p11, 1, 0 }
  0x16   : > { %s1378_s7 = scalar_select %p1175_p12, 1, 0 }
  0x17   : > { %s1379_s8 = scalar_select %p1179_p13, 1, 0 }
  0x18   : > { %p893_p1 = pneg %p1179_p13  ;;  %s176_s10 = sshll.u32 %s1076_s9, 4  ;;  %s177_s10 = int_to_ptr.vmem [resolvable:$true] %s176_s10 }
  0x19   : > { %s948_s14 = scalar_lea.hbm %s1366_s1, 2048 }
  0x1a   : > { %p1187_p2 = pnand %p893_p1, %p1371_p4  ;;  %p949_p0 = scmp.ne.s32.totalorder %s1366_s1, %s948_s14 }
  0x1b   : > { %p955_p9 = scmp.lt.u32.totalorder %s948_s14, %s1366_s1 }
  0x1c   : > { %p950_p3 = pneg %p1187_p2 }
  0x1e   : > { %p951_p7 = pnand %p950_p3, %p949_p0 }
  0x20   : > { %p952_p8 = pneg %p951_p7 }
  0x22   : > { %p957_p10 = pnand %p955_p9, %p952_p8 }
  0x24   : > { %960 = shalt.err (!%p957_p10)
}
  0x25   : > { %s961_s19 = scalar_lea.vmem %s177_s10, 2048  ;;  %p969_p11 = scmp.lt.s32.totalorder %s177_s10, %s177_s10 }
  0x26   : > { %p962_p1 = scmp.ne.s32.totalorder %s177_s10, %s961_s19  ;;  %p970_p6 = scmp.lt.s32.totalorder %s961_s19, %s961_s19 }
  0x28   : > { %p964_p4 = pnand %p962_p1, %p950_p3  ;;  %p971_p13 = por %p970_p6, %p969_p11 }
  0x2a   : > { %p965_p12 = pneg %p964_p4 }
  0x2c   : > { %p972_p5 = pnand %p971_p13, %p965_p12 }
  0x2e   : > { %975 = shalt.err (!%p972_p5)
}
  0x2f   : > { %s1077_s24 = smov 128   ;;  %s1078_s26 = smov 8  }
  0x30   : > { %896 = dma.hbm_to_vmem [thread:$0]  (!%p1187_p2), %s1366_s1, 2048, %s177_s10, [#allocation7], %s1077_s24, %s1077_s24, %s1078_s26  }
  0x31   : > { %p673_p0 = scmp.ge.s32.totalorder %s1074_s23, 3 }
  0x32   : > { %p1381_p7 = scmp.ne.s32.totalorder (!%p673_p0), %s1375_s29, 0 }
  0x33   : > { %195 = sbr.rel (%p673_p0) target bundleno = 93 (0x5d), region = 32 }
  0x3a   : > { %198 = sbr.rel (!%p1381_p7) target bundleno = 93 (0x5d), region = 36  ;;  %s199_s12 = sand.u32 (%p1381_p7), 1, %s1070_s22  }
  0x3b   : > { %s675_s13 = sshll.u32 (%p1381_p7), %s1074_s23, 4  ;;  %s674_s14 = sshll.u32 (%p1381_p7), %s199_s12, 7 }
  0x3c   : > { %s205_s15 = ssub.s32 (%p1381_p7), 40, %s675_s13  ;;  %s1215_s17 = scalar_lea.sflag (%p1381_p7), [#allocation4], %s199_s12 }
  0x3d   : > { %p206_p4 = scmp.lt.s32.totalorder (%p1381_p7), %s205_s15, 16  ;;  %s203_s10 = scalar_lea.vmem (%p1381_p7), [#allocation3], %s674_s14 }
  0x41   : > { %s1393_s15 = smov (!%p206_p4, %s205_s15), 16 }
  0x42   : > { %s1212_s16 = sshll.u32 %s1393_s15, 7 }
  0x43   : > { %s210_s11 = ssub.s32 2048, %s1212_s16 }
  0x44   : > { %211 = vsyncadd %s1215_s17, %s210_s11  ;;  %p677_p5 = scmp.ne.s32.totalorder %s1212_s16, 0  ;;  %s689_s29 = sshll.u32 %s1074_s23, 11 }
  0x45   : > { %s1223_s24 = scalar_lea.hbm %s1365_s0, %s689_s29  ;;  %s216_s26 = sshll.u32 %s203_s10, 4  ;;  %s1225_s26 = int_to_ptr.vmem [resolvable:$true] %s216_s26 }
  0x46   : > { %s976_s27 = scalar_lea.hbm %s1223_s24, %s1212_s16  ;;  %s980_s13 = scalar_lea.hbm %s1365_s0, 5120 }
  0x47   : > { %p977_p6 = scmp.ne.s32.totalorder %s1223_s24, %s976_s27  ;;  %p981_p13 = scmp.lt.u32.totalorder %s1223_s24, %s1365_s0 }
  0x48   : > { %p982_p2 = scmp.lt.u32.totalorder %s980_s13, %s976_s27  ;;  %p984_p8 = scmp.lt.u32.totalorder %s976_s27, %s1223_s24 }
  0x49   : > { %p978_p11 = pnand %p977_p6, %p677_p5 }
  0x4a   : > { %p983_p3 = por %p982_p2, %p981_p13 }
  0x4b   : > { %p979_p12 = pneg %p978_p11 }
  0x4c   : > { %p985_p9 = por %p984_p8, %p983_p3 }
  0x4e   : > { %p986_p10 = pnand %p985_p9, %p979_p12 }
  0x50   : > { %989 = shalt.err (!%p986_p10)
}
  0x51   : > { %s990_s11 = scalar_lea.vmem %s1225_s26, %s1212_s16  ;;  %s1079_s10 = smov [#allocation3]  }
  0x52   : > { %p991_p1 = scmp.ne.s32.totalorder %s1225_s26, %s990_s11  ;;  %s994_s29 = sshll.u32 %s1079_s10, 4  ;;  %s995_s29 = int_to_ptr.vmem [resolvable:$false] %s994_s29 }
  0x53   : > { %s996_s18 = scalar_lea.vmem %s995_s29, 4096  ;;  %p997_p4 = scmp.lt.s32.totalorder %s1225_s26, %s995_s29 }
  0x54   : > { %p992_p0 = pnand %p991_p1, %p677_p5  ;;  %p998_p6 = scmp.lt.s32.totalorder %s996_s18, %s990_s11 }
  0x56   : > { %p993_p7 = pneg %p992_p0  ;;  %p999_p11 = por %p998_p6, %p997_p4 }
  0x58   : > { %p1000_p13 = pnand %p999_p11, %p993_p7 }
  0x5a   : > { %1003 = shalt.err (!%p1000_p13)
}
  0x5b   : > { %s1080_s19 = smov 128   ;;  %s1081_s27 = smov 8  }
  0x5c   : > { %222 = dma.hbm_to_vmem [thread:$0]  (%p677_p5), %s1223_s24, %s1212_s16, %s1225_s26, %s1215_s17, %s1080_s19, %s1080_s19, %s1081_s27  }
  0x5d PF: > { %p1382_p12 = scmp.ne.s32.totalorder %s1379_s8, 0 }
  0x5e   : > { %s1255_s9 = sand.u32 (!%p1382_p12), 1, %s1066_s21   ;;  %p1383_p2 = scmp.ne.s32.totalorder (!%p1382_p12), %s1376_s30, 0 }
  0x5f   : > { %228 = sbr.rel (%p1382_p12) target bundleno = 678 (0x2a6), region = 40  ;;  %s682_s12 = sshll.u32 (!%p1382_p12), %s1255_s9, 7 }
  0x60   : > { %s231_s13 = scalar_lea.sflag (!%p1382_p12), [#allocation4], %s1255_s9  ;;  %s1259_s14 = scalar_lea.vmem (!%p1382_p12), [#allocation3], %s682_s12 }
  0x66   : > { %1049 = dma.done.wait (%p1383_p2), %s231_s13, 2048  }
  0x67   : > { %1051 = vsyncadd (%p1383_p2), %s231_s13, 4294965248  ;;  %p1384_p5 = scmp.eq.s32.totalorder %s1140_s4, 0 }
  0x69   : > { %1053 = dma.done.wait (%p1384_p5), [#allocation7], 2048   ;;  %p1385_p3 = pmov %p1384_p5 }
  0x6a   : > { %v285_v0 = vld [vmem:[#allocation6] sm:$0xff]  ;;  %v286_v1 = vld [vmem:[#allocation6 + $0x8] sm:$0xff]  ;;  %v287_v2 = vld [vmem:[#allocation6 + $0x10] sm:$0xff]  ;;  %v1082_v40 = vmov 0.0|0.0   ;;  %vm1083_vm0 = vmmov 0   ;;  %v1084_v41 = vmov 0.0  }
  0x6b   : > { %1055 = vsyncadd (%p1385_p3), [#allocation7], 4294965248  ;;  %v830_v3 = vpack.c.bf16 %v286_v1, %v285_v0  ;;  %v288_v4 = vld [vmem:[#allocation6 + $0x18] sm:$0xff]  ;;  %v289_v6 = vld [vmem:[#allocation6 + $0x20] sm:$0xff]  ;;  %862 = vmatprep.subr.bf16.mxu1 %v1082_v40  ;;  %827 = vmatprep.mubr.msk.f32.mxu1 %vm1083_vm0, %v1084_v41  ;;  %s502_s24 = sld [smem:[#allocation2]]  ;;  %s686_s26 = sshll.u32 %s1140_s4, 4 }
  0x6c   : > { %v834_v5 = vpack.c.bf16 %v288_v4, %v287_v2  ;;  %v290_v7 = vld [vmem:[#allocation6 + $0x28] sm:$0xff]  ;;  %v269_v9 = vld [vmem:[%s1259_s14] sm:$0xff]  ;;  %v291_v10 = vld [vmem:[#allocation6 + $0x30] sm:$0xff]  ;;  %s263_s15 = scalar_lea.vmem [#allocation8], %s1255_s9  ;;  %s1322_s18 = scalar_lea.hbm %s1370_s5, %s686_s26 }
  0x6d   : > { %831 = vmatprep.subr.bf16.mxu0 %v830_v3  ;;  %v838_v8 = vpack.c.bf16 %v290_v7, %v289_v6  ;;  %v292_v11 = vld [vmem:[#allocation6 + $0x38] sm:$0xff]  ;;  %771 = vmatprep.mubr.f32.mxu0 %v269_v9  ;;  %v293_v13 = vld [vmem:[#allocation6 + $0x40] sm:$0xff]  ;;  %v294_v14 = vld [vmem:[#allocation6 + $0x48] sm:$0xff]  ;;  %s594_s11 = sshll.u32 %s263_s15, 4  ;;  %s582_s19 = scalar_lea.sflag [#allocation5], %s1255_s9  ;;  %s1324_s11 = int_to_ptr.vmem [resolvable:$true] %s594_s11 }
  0x6e   : > { %833 = vmatpush3.bf16.msra.mxu0 %v830_v3  ;;  %v842_v12 = vpack.c.bf16 %v292_v11, %v291_v10  ;;  %v846_v15 = vpack.c.bf16 %v294_v14, %v293_v13  ;;  %v295_v16 = vld [vmem:[#allocation6 + $0x50] sm:$0xff]  ;;  %v296_v17 = vld [vmem:[#allocation6 + $0x58] sm:$0xff]  ;;  %v297_v19 = vld [vmem:[#allocation6 + $0x60] sm:$0xff]  ;;  %s1004_s27 = scalar_lea.vmem %s1324_s11, 16  ;;  %p1386_p9 = scmp.ne.s32.totalorder %s1377_s6, 0 }
  0x6f   : > { %835 = vmatprep.subr.bf16.mxu0 %v834_v5  ;;  %v850_v18 = vpack.c.bf16 %v296_v17, %v295_v16  ;;  %v298_v20 = vld [vmem:[#allocation6 + $0x68] sm:$0xff]  ;;  %v299_v22 = vld [vmem:[#allocation6 + $0x70] sm:$0xff]  ;;  %v300_v23 = vld [vmem:[#allocation6 + $0x78] sm:$0xff]  ;;  %p1005_p8 = scmp.ne.s32.totalorder %s1324_s11, %s1004_s27  ;;  %s1085_s4 = smov [#allocation8]  }
  0x70   : > { %v854_v21 = vpack.c.bf16 %v298_v20, %v297_v19  ;;  %v858_v24 = vpack.c.bf16 %v300_v23, %v299_v22  ;;  %v270_v25 = vld [vmem:[%s1259_s14 + $0x8] sm:$0xff]  ;;  %v271_v26 = vld [vmem:[%s1259_s14 + $0x10] sm:$0xff]  ;;  %v272_v27 = vld [vmem:[%s1259_s14 + $0x18] sm:$0xff]  ;;  %s1008_s12 = sshll.u32 %s1085_s4, 4  ;;  %s1009_s12 = int_to_ptr.vmem [resolvable:$false] %s1008_s12 }
  0x71   : > { %v273_v28 = vld [vmem:[%s1259_s14 + $0x20] sm:$0xff]  ;;  %v274_v29 = vld [vmem:[%s1259_s14 + $0x28] sm:$0xff]  ;;  %v275_v30 = vld [vmem:[%s1259_s14 + $0x30] sm:$0xff]  ;;  %p1006_p10 = pnand %p1005_p8, %p1386_p9  ;;  %s1010_s13 = scalar_lea.vmem %s1009_s12, 32 }
  0x72   : > { %837 = vmatpush3.bf16.msra.mxu0 %v834_v5  ;;  %v276_v31 = vld [vmem:[%s1259_s14 + $0x38] sm:$0xff]  ;;  %v277_v32 = vld [vmem:[%s1259_s14 + $0x40] sm:$0xff]  ;;  %v278_v33 = vld [vmem:[%s1259_s14 + $0x48] sm:$0xff]  ;;  %p1011_p0 = scmp.lt.s32.totalorder %s1324_s11, %s1009_s12  ;;  %p1012_p7 = scmp.lt.s32.totalorder %s1010_s13, %s1004_s27 }
  0x73   : > { %839 = vmatprep.subr.bf16.mxu0 %v838_v8  ;;  %v279_v34 = vld [vmem:[%s1259_s14 + $0x50] sm:$0xff]  ;;  %v280_v35 = vld [vmem:[%s1259_s14 + $0x58] sm:$0xff]  ;;  %v281_v36 = vld [vmem:[%s1259_s14 + $0x60] sm:$0xff]  ;;  %p1007_p1 = pneg %p1006_p10 }
  0x74   : > { %v282_v37 = vld [vmem:[%s1259_s14 + $0x68] sm:$0xff]  ;;  %v283_v38 = vld [vmem:[%s1259_s14 + $0x70] sm:$0xff]  ;;  %v284_v39 = vld [vmem:[%s1259_s14 + $0x78] sm:$0xff]  ;;  %p1013_p4 = por %p1012_p7, %p1011_p0 }
  0x75   : > { %v1289_v42 = vld [vmem:[%s1367_s2] ss:$0 sm:$0xff] }
  0x76   : > { %841 = vmatpush3.bf16.msra.mxu0 %v838_v8  ;;  %p1014_p6 = pnand %p1013_p4, %p1007_p1 }
  0x77   : > { %843 = vmatprep.subr.bf16.mxu0 %v842_v12 }
  0x7a   : > { %845 = vmatpush3.bf16.msra.mxu0 %v842_v12 }
  0x7b   : > { %847 = vmatprep.subr.bf16.mxu0 %v846_v15 }
  0x7e   : > { %849 = vmatpush3.bf16.msra.mxu0 %v846_v15 }
  0x7f   : > { %851 = vmatprep.subr.bf16.mxu0 %v850_v18 }
  0x82   : > { %853 = vmatpush3.bf16.msra.mxu0 %v850_v18 }
  0x83   : > { %855 = vmatprep.subr.bf16.mxu0 %v854_v21 }
  0x86   : > { %857 = vmatpush3.bf16.msra.mxu0 %v854_v21 }
  0x87   : > { %859 = vmatprep.subr.bf16.mxu0 %v858_v24 }
  0x8a   : > { %861 = vmatpush3.bf16.msra.mxu0 %v858_v24 }
  0x8d   : > { %772 = vmatmul.mubr.f32.vlgmr.msra.gmra.mrb[0].mxu0 %v270_v25 }
  0x8e   : > { %774 = vmatprep.mubr.f32.mxu0 %v271_v26 }
  0x91   : > { %775 = vmatmul.mubr.f32.gmra.mrb[2].mxu0 %v272_v27 }
  0x92   : > { %777 = vmatprep.mubr.f32.mxu0 %v273_v28 }
  0x95   : > { %778 = vmatmul.mubr.f32.gmra.mrb[4].mxu0 %v274_v29 }
  0x96   : > { %780 = vmatprep.mubr.f32.mxu0 %v275_v30 }
  0x99   : > { %781 = vmatmul.mubr.f32.gmra.mrb[6].mxu0 %v276_v31 }
  0x9a   : > { %783 = vmatprep.mubr.f32.mxu0 %v277_v32 }
  0x9d   : > { %784 = vmatmul.mubr.f32.gmra.mrb[8].mxu0 %v278_v33 }
  0x9e   : > { %786 = vmatprep.mubr.f32.mxu0 %v279_v34 }
  0xa1   : > { %787 = vmatmul.mubr.f32.gmra.mrb[10].mxu0 %v280_v35 }
  0xa2   : > { %789 = vmatprep.mubr.f32.mxu0 %v281_v36 }
  0xa5   : > { %790 = vmatmul.mubr.f32.gmra.mrb[12].mxu0 %v282_v37 }
  0xa6   : > { %792 = vmatprep.mubr.f32.mxu0 %v283_v38 }
  0xa9   : > { %793 = vmatmul.mubr.f32.gmra.mrb[14].mxu0 %v284_v39 }
 0x160   : > { %v773_v43 = vpop.f32.mrb[0].mxu0 }
 0x161   : > { %v380_v44 = vadd.f32 %v773_v43, %v1289_v42  ;;  %v374_v45 = vpop.f32.mrb[1].mxu0 }
 0x162   : > { %v375_v46 = vadd.f32 %v1289_v42, %v374_v45 }
 0x163   : > { %v470_v47 = vmul.f32 128.0, %v380_v44  ;;  %vm454_vm1 = vcmp.ge.f32.partialorder %v380_v44, 0.0 }
 0x164   : > { %v469_v48 = vmul.f32 128.0, %v375_v46  ;;  %v776_v49 = vpop.f32.mrb[2].mxu0  ;;  %vm453_vm2 = vcmp.ge.f32.partialorder %v375_v46, 0.0 }
 0x165   : > { %v390_v50 = vadd.f32 %v776_v49, %v1289_v42  ;;  %v384_v51 = vpop.f32.mrb[3].mxu0  ;;  %v486_v52 = vsel %vm454_vm1, %v380_v44, %v470_v47 }
 0x166   : > { %v385_v53 = vadd.f32 %v1289_v42, %v384_v51  ;;  %v485_v54 = vsel %vm453_vm2, %v375_v46, %v469_v48 }
 0x167   : > { %vm456_vm3 = vcmp.ge.f32.partialorder %v390_v50, 0.0  ;;  %v472_v55 = vmul.f32 128.0, %v390_v50  ;;  %v863_v56 = vpack.c.bf16 %v486_v52, %v485_v54 }
 0x168   : > { %vm455_vm4 = vcmp.ge.f32.partialorder %v385_v53, 0.0  ;;  %v471_v57 = vmul.f32 128.0, %v385_v53  ;;  %v779_v58 = vpop.f32.mrb[4].mxu0 }
 0x169   : > { %864 = vmatpush3.bf16.xpose.msra.mxu1 %v863_v56  ;;  %v400_v59 = vadd.f32 %v779_v58, %v1289_v42  ;;  %v394_v60 = vpop.f32.mrb[5].mxu0  ;;  %v488_v61 = vsel %vm456_vm3, %v390_v50, %v472_v55 }
 0x16a   : > { %v395_v62 = vadd.f32 %v1289_v42, %v394_v60  ;;  %865 = vmatprep.subr.bf16.mxu1 %v1082_v40  ;;  %v487_v63 = vsel %vm455_vm4, %v385_v53, %v471_v57  ;;  %v503_v53 = vstv %s502_s24 }
 0x16b   : > { %vm458_vm5 = vcmp.ge.f32.partialorder %v400_v59, 0.0  ;;  %v474_v0 = vmul.f32 128.0, %v400_v59  ;;  %v866_v1 = vpack.c.bf16 %v488_v61, %v487_v63 }
 0x16c   : > { %vm457_vm6 = vcmp.ge.f32.partialorder %v395_v62, 0.0  ;;  %v473_v2 = vmul.f32 128.0, %v395_v62  ;;  %v782_v3 = vpop.f32.mrb[6].mxu0 }
 0x16d   : > { %v410_v4 = vadd.f32 %v782_v3, %v1289_v42  ;;  %v404_v5 = vpop.f32.mrb[7].mxu0  ;;  %v490_v6 = vsel %vm458_vm5, %v400_v59, %v474_v0 }
 0x16e   : > { %v405_v7 = vadd.f32 %v1289_v42, %v404_v5  ;;  %v489_v8 = vsel %vm457_vm6, %v395_v62, %v473_v2 }
 0x16f   : > { %vm460_vm7 = vcmp.ge.f32.partialorder %v410_v4, 0.0  ;;  %v476_v9 = vmul.f32 128.0, %v410_v4  ;;  %v869_v10 = vpack.c.bf16 %v490_v6, %v489_v8 }
 0x170   : > { %vm459_vm8 = vcmp.ge.f32.partialorder %v405_v7, 0.0  ;;  %v475_v11 = vmul.f32 128.0, %v405_v7  ;;  %v785_v12 = vpop.f32.mrb[8].mxu0 }
 0x171   : > { %867 = vmatpush3.bf16.xpose.msra.mxu1 %v866_v1  ;;  %v420_v13 = vadd.f32 %v785_v12, %v1289_v42  ;;  %v414_v14 = vpop.f32.mrb[9].mxu0  ;;  %v492_v15 = vsel %vm460_vm7, %v410_v4, %v476_v9 }
 0x172   : > { %868 = vmatprep.subr.bf16.mxu1 %v1082_v40  ;;  %v415_v16 = vadd.f32 %v1289_v42, %v414_v14  ;;  %v491_v17 = vsel %vm459_vm8, %v405_v7, %v475_v11 }
 0x173   : > { %vm462_vm9 = vcmp.ge.f32.partialorder %v420_v13, 0.0  ;;  %v478_v18 = vmul.f32 128.0, %v420_v13  ;;  %v872_v19 = vpack.c.bf16 %v492_v15, %v491_v17 }
 0x174   : > { %vm461_vm10 = vcmp.ge.f32.partialorder %v415_v16, 0.0  ;;  %v477_v20 = vmul.f32 128.0, %v415_v16  ;;  %v788_v21 = vpop.f32.mrb[10].mxu0 }
 0x175   : > { %v430_v22 = vadd.f32 %v788_v21, %v1289_v42  ;;  %v424_v23 = vpop.f32.mrb[11].mxu0  ;;  %v494_v24 = vsel %vm462_vm9, %v420_v13, %v478_v18 }
 0x176   : > { %v425_v25 = vadd.f32 %v1289_v42, %v424_v23  ;;  %v493_v26 = vsel %vm461_vm10, %v415_v16, %v477_v20 }
 0x177   : > { %vm464_vm11 = vcmp.ge.f32.partialorder %v430_v22, 0.0  ;;  %v480_v27 = vmul.f32 128.0, %v430_v22  ;;  %v875_v28 = vpack.c.bf16 %v494_v24, %v493_v26 }
 0x178   : > { %vm463_vm12 = vcmp.ge.f32.partialorder %v425_v25, 0.0  ;;  %v479_v29 = vmul.f32 128.0, %v425_v25  ;;  %v791_v30 = vpop.f32.mrb[12].mxu0 }
 0x179   : > { %870 = vmatpush3.bf16.xpose.msra.mxu1 %v869_v10  ;;  %v440_v31 = vadd.f32 %v791_v30, %v1289_v42  ;;  %v434_v32 = vpop.f32.mrb[13].mxu0  ;;  %v496_v33 = vsel %vm464_vm11, %v430_v22, %v480_v27 }
 0x17a   : > { %871 = vmatprep.subr.bf16.mxu1 %v1082_v40  ;;  %v435_v34 = vadd.f32 %v1289_v42, %v434_v32  ;;  %v495_v35 = vsel %vm463_vm12, %v425_v25, %v479_v29 }
 0x17b   : > { %vm466_vm13 = vcmp.ge.f32.partialorder %v440_v31, 0.0  ;;  %v482_v36 = vmul.f32 128.0, %v440_v31  ;;  %v878_v37 = vpack.c.bf16 %v496_v33, %v495_v35 }
 0x17c   : > { %vm465_vm14 = vcmp.ge.f32.partialorder %v435_v34, 0.0  ;;  %v481_v38 = vmul.f32 128.0, %v435_v34  ;;  %v794_v39 = vpop.f32.mrb[14].mxu0 }
 0x17d   : > { %v450_v41 = vadd.f32 %v794_v39, %v1289_v42  ;;  %v444_v43 = vpop.f32.mrb[15].mxu0  ;;  %v498_v44 = vsel %vm466_vm13, %v440_v31, %v482_v36 }
 0x17e   : > { %v445_v45 = vadd.f32 %v1289_v42, %v444_v43  ;;  %v497_v46 = vsel %vm465_vm14, %v435_v34, %v481_v38  ;;  %v501_v42 = vld [vmem:[%s1368_s3] sm:$0x1] }
 0x17f   : > { %vm468_vm15 = vcmp.ge.f32.partialorder %v450_v41, 0.0  ;;  %v484_v47 = vmul.f32 128.0, %v450_v41  ;;  %v881_v48 = vpack.c.bf16 %v498_v44, %v497_v46 }
 0x180   : > { %vm467_vm0 = vcmp.ge.f32.partialorder %v445_v45, 0.0  ;;  %v483_v49 = vmul.f32 128.0, %v445_v45 }
 0x181   : > { %873 = vmatpush3.bf16.xpose.msra.mxu1 %v872_v19  ;;  %v500_v50 = vsel %vm468_vm15, %v450_v41, %v484_v47 }
 0x182   : > { %874 = vmatprep.subr.bf16.mxu1 %v1082_v40  ;;  %v499_v51 = vsel %vm467_vm0, %v445_v45, %v483_v49 }
 0x183   : > { %v884_v52 = vpack.c.bf16 %v500_v50, %v499_v51 }
 0x189   : > { %876 = vmatpush3.bf16.xpose.msra.mxu1 %v875_v28 }
 0x18a   : > { %877 = vmatprep.subr.bf16.mxu1 %v1082_v40 }
 0x191   : > { %879 = vmatpush3.bf16.xpose.msra.mxu1 %v878_v37 }
 0x192   : > { %880 = vmatprep.subr.bf16.mxu1 %v1082_v40 }
 0x199   : > { %882 = vmatpush3.bf16.xpose.msra.mxu1 %v881_v48 }
 0x19a   : > { %883 = vmatprep.subr.bf16.mxu1 %v1082_v40 }
 0x1a1   : > { %885 = vmatpush3.bf16.xpose.msra.mxu1 %v884_v52 }
 0x1a8   : > { %828 = vmatmul.mubr.f32.vlgmr.msra.gmra.mrb[0].mxu1 %v501_v42 }
 0x27b   : > { %v570_v54 = vpop.f32.mrb[0].mxu1 }
 0x27c   : > { %v571_v55 = vadd.f32 %v570_v54, %v503_v53  ;;  %v829_v56 = vpop.f32.mrb[1].mxu1 }
 0x27e   : > { %v685_v57 = vmul.f32 -1.442695, %v571_v55 }
 0x280   : > { %944 = vpow2.f32 %v685_v57 }
 0x28a   : > { %v945_v58 = vpop.eup %944 }
 0x28b   : > { %v577_v59 = vadd.f32 1.0, %v945_v58 }
 0x28d   : > { %946 = vrcp.f32 %v577_v59 }
 0x297   : > { %v947_v40 = vpop.eup %946 }
 0x298   : > { %580 = vst [vmem:[%s263_s15] sm:$0x1] %v947_v40 }
 0x299   : > { %1017 = shalt.err (!%p1014_p6)
}
 0x29a   : > { %s1018_s9 = scalar_lea.hbm %s1322_s18, 16  ;;  %s1022_s8 = scalar_lea.hbm %s1370_s5, 48 }
 0x29b   : > { %p1019_p11 = scmp.ne.s32.totalorder %s1322_s18, %s1018_s9  ;;  %p1023_p2 = scmp.lt.u32.totalorder %s1322_s18, %s1370_s5 }
 0x29c   : > { %p1024_p5 = scmp.lt.u32.totalorder %s1022_s8, %s1018_s9  ;;  %p1026_p8 = scmp.lt.u32.totalorder %s1018_s9, %s1322_s18 }
 0x29d   : > { %p1020_p13 = pnand %p1019_p11, %p1386_p9 }
 0x29e   : > { %p1025_p3 = por %p1024_p5, %p1023_p2 }
 0x29f   : > { %p1021_p12 = pneg %p1020_p13 }
 0x2a0   : > { %p1027_p10 = por %p1026_p8, %p1025_p3 }
 0x2a2   : > { %p1028_p1 = pnand %p1027_p10, %p1021_p12 }
 0x2a4   : > { %1031 = shalt.err (!%p1028_p1)
}
 0x2a5   : > { %891 = dma.vmem_to_hbm [thread:$0]  (%p1386_p9), %s1324_s11, 16, %s1322_s18, %s582_s19  }
 0x2a6 PF: > { %p903_p0 = scmp.ge.s32.totalorder %s1074_s23, 2  ;;  %s606_s24 = sand.u32 1, %s1062_s20  }
 0x2a7   : > { %p1387_p7 = scmp.ne.s32.totalorder %s1378_s7, 0  ;;  %s607_s26 = scalar_lea.sflag [#allocation5], %s606_s24 }
 0x2a9   : > { %p898_p4 = pnand %p903_p0, %p1387_p7 }
 0x2ab   : > { %1057 = dma.done.wait (!%p898_p4), %s607_s26, 16  }
 0x2ac   : > { %1059 = vsyncadd (!%p898_p4), %s607_s26, 4294967280  ;;  %p20_p6 = scmp.ge.s32.totalorder %s1144_s25, 5   ;;  %s1388_s20 = smov %s1066_s21 }
 0x2ad   : > { %s1389_s21 = smov %s1070_s22  ;;  %s1390_s22 = smov %s1156_s28 }
 0x2ae   : > { %s1391_s23 = smov %s1144_s25  ;;  %22 = sbr.rel (!%p20_p6) target bundleno = 8 (0x8), region = 89 }
 0x2b5   :  { %611 = vsyncpa [#allocation4], 1 }
 0x2b6   :  { %613 = vsyncpa [#allocation4 + $0x1], 1 }
 0x2b7   :  { %614 = vsyncpa [#allocation7], 1 }
 0x2b8   :  { %615 = vsyncpa [#allocation5], 1 }
 0x2b9   :  { %617 = vsyncpa [#allocation5 + $0x1], 1 }

</bundles_post_ra>
